<compile_context>
chip_gen: v5e
topology: v5e:2x2
jax: 0.10.0
libtpu: 0.0.40
codegen_flags: <defaults>
</compile_context>

<pallas_src>
import jax
import jax.numpy as jnp
from jax.experimental import pallas as pl
from jax.experimental.pallas import tpu as pltpu

LANE = 128      # lane width: padded weight dims (hidden / action) round to this
SUBLANE = 16    # batch-tile alignment (safe for bf16 sublane packing, ok for f32)


def _round_up(x, m):
    return ((x + m - 1) // m) * m


def _cdiv(a, b):
    return (a + b - 1) // b


def qnet_kernel(x_ref, w1_ref, b1_ref, w2_ref, b2_ref, o_ref):
    # Activations arrive as raw f32; cast to the matmul dtype in-kernel.
    x = x_ref[...].astype(w1_ref.dtype)
    # Hidden layer: (TB, F) @ (F, H_pad) on the MXU, f32 accumulate.
    h = jnp.dot(x, w1_ref[...], preferred_element_type=jnp.float32)
    # Bias + ReLU epilogue in f32 (VPU), then cast down right away — it is
    # needed in the matmul dtype for the second dot and this bounds live VMEM.
    h = jnp.maximum(h + b1_ref[...], 0.0).astype(w2_ref.dtype)
    # Output layer: (TB, H_pad) @ (H_pad, A_pad), f32 accumulate, f32 bias add.
    q = jnp.dot(h, w2_ref[...], preferred_element_type=jnp.float32) + b2_ref[...]
    # Narrow writeback: store only the real action columns (o_ref last dim == A).
    o_ref[...] = q[:, : o_ref.shape[-1]].astype(o_ref.dtype)


def init_qnetwork_params(key, obs_flat, hidden_size, action_size):
    """Deterministic init mimicking nn.Linear default U[-1/sqrt(fan_in), 1/sqrt(fan_in)].

    Stored as (in, out) so the kernel computes x @ W (== torch's x @ W.T).
    """
    k1, k2, k3, k4 = jax.random.split(key, 4)
    lim1 = 1.0 / jnp.sqrt(jnp.float32(obs_flat))
    lim2 = 1.0 / jnp.sqrt(jnp.float32(hidden_size))
    w1 = jax.random.uniform(k1, (obs_flat, hidden_size), jnp.float32, -lim1, lim1)
    b1 = jax.random.uniform(k2, (hidden_size,), jnp.float32, -lim1, lim1)
    w2 = jax.random.uniform(k3, (hidden_size, action_size), jnp.float32, -lim2, lim2)
    b2 = jax.random.uniform(k4, (action_size,), jnp.float32, -lim2, lim2)
    return w1, b1, w2, b2


def prepare_qnetwork_params(w1, b1, w2, b2, matmul_dtype=jnp.bfloat16):
    """One-time packing into the kernel-ready layout (done at init, NOT per call).

    Only the hidden and action dims are zero-padded to 128-lane multiples; the
    feature (input) dim of w1 stays unpadded so the activation block can be
    passed in raw. Weights are cast to `matmul_dtype`; biases stay f32 (the
    epilogue runs in f32). Zero padding is mathematically inert: padded hidden
    units have zero bias so ReLU(0)=0 kills their w2 contribution, and padded
    action columns are never stored (the kernel writes only the real columns).
    """
    f, h = w1.shape
    h2, a = w2.shape
    assert h == h2 and b1.shape == (h,) and b2.shape == (a,)
    h_pad = _round_up(h, LANE)
    a_pad = _round_up(a, LANE)
    w1p = jnp.zeros((f, h_pad), matmul_dtype).at[:, :h].set(w1.astype(matmul_dtype))
    w2p = jnp.zeros((h_pad, a_pad), matmul_dtype).at[:h, :a].set(w2.astype(matmul_dtype))
    b1p = jnp.zeros((1, h_pad), jnp.float32).at[0, :h].set(b1.astype(jnp.float32))
    b2p = jnp.zeros((1, a_pad), jnp.float32).at[0, :a].set(b2.astype(jnp.float32))
    return {
        "w1": w1p, "b1": b1p, "w2": w2p, "b2": b2p,
        "obs_flat": f, "hidden": h, "action_size": a,
        "matmul_dtype": matmul_dtype,
    }


def qnetwork_forward(obs, params, max_tile_b=4096):
    """Pallas-backed forward matching QNetwork.forward.

    obs: (batch, *obs_size) -> flattened to (batch, prod(obs_size))
    returns: (batch, action_size) float32
    """
    batch = obs.shape[0]
    f = params["obs_flat"]
    a = params["action_size"]
    w1, b1, w2, b2 = params["w1"], params["b1"], params["w2"], params["b2"]
    h_pad = w1.shape[1]
    a_pad = w2.shape[1]
    mm_bytes = jnp.dtype(params["matmul_dtype"]).itemsize

    x = obs.reshape(batch, -1).astype(jnp.float32)
    assert x.shape[1] == f, f"obs flattens to {x.shape[1]} features, expected {f}"

    # Batch tile: as big as allowed, but capped at ceil(batch/2) so there are
    # >= 2 grid steps whenever possible (lets v7x shard tiles over its 2 TCs;
    # a no-op on single-TC v5e/v6e).
    half = _round_up(_cdiv(batch, 2), SUBLANE)
    tile_b = max(SUBLANE, min(_round_up(max_tile_b, SUBLANE), half))
    b_pad = _round_up(batch, tile_b)
    if b_pad != batch:
        # Batch-only padding of the raw activations: contiguous, cheap, and the
        # zero rows are sliced off below.
        x = jnp.pad(x, ((0, b_pad - batch), (0, 0)))

    # Explicit VMEM budget: double-buffered x/out tiles + resident weights +
    # the in-kernel hidden/q intermediates, with 2x headroom. Kept well under
    # v5e's 16 MiB scoped default and v7x's 64 MiB physical VMEM.
    vmem_need = (
        2 * tile_b * f * 4                              # x tile (f32), double-buffered
        + 2 * tile_b * a * 4                            # out tile (f32), double-buffered
        + 2 * (f * h_pad + h_pad * a_pad) * mm_bytes    # weights
        + 2 * (h_pad + a_pad) * 4                       # biases
        + tile_b * h_pad * (4 + mm_bytes)               # hidden f32 + cast copy
        + tile_b * a_pad * 4                            # q (f32) before narrow store
    )
    vmem_limit = int(min(32 * (1 << 20), max(2 * vmem_need, 8 * (1 << 20))))

    flops = 2 * b_pad * (f * h_pad + h_pad * a_pad)
    bytes_accessed = (
        b_pad * f * 4 + b_pad * a * 4
        + (f * h_pad + h_pad * a_pad) * mm_bytes + (h_pad + a_pad) * 4
    )

    out = pl.pallas_call(
        qnet_kernel,
        out_shape=jax.ShapeDtypeStruct((b_pad, a), jnp.float32),
        grid=(b_pad // tile_b,),
        in_specs=[
            pl.BlockSpec((tile_b, f), lambda i: (i, 0)),     # x: tiled over batch, full (unpadded) feature dim
            pl.BlockSpec((f, h_pad), lambda i: (0, 0)),      # w1: VMEM-resident
            pl.BlockSpec((1, h_pad), lambda i: (0, 0)),      # b1: VMEM-resident
            pl.BlockSpec((h_pad, a_pad), lambda i: (0, 0)),  # w2: VMEM-resident
            pl.BlockSpec((1, a_pad), lambda i: (0, 0)),      # b2: VMEM-resident
        ],
        out_specs=pl.BlockSpec((tile_b, a), lambda i: (i, 0)),  # narrow (real actions only) writeback
        compiler_params=pltpu.CompilerParams(
            dimension_semantics=("parallel",),               # v7x: split batch tiles over 2 TCs
            vmem_limit_bytes=vmem_limit,
        ),
        cost_estimate=pl.CostEstimate(
            flops=flops, transcendentals=0, bytes_accessed=bytes_accessed),
    )(x, w1, b1, w2, b2)

    return out if b_pad == batch else out[:batch]


if __name__ == "__main__":
    # Small shapes consistent with the module: obs_size=(4, 16) -> 64 flat features.
    batch = 2
    obs_size = (4, 16)
    obs_flat = obs_size[0] * obs_size[1]
    hidden_size = 32
    action_size = 8

    key = jax.random.PRNGKey(0)
    k_obs, k_params = jax.random.split(key)
    obs = jax.random.normal(k_obs, (batch,) + obs_size, dtype=jnp.float32)
    w1, b1, w2, b2 = init_qnetwork_params(k_params, obs_flat, hidden_size, action_size)

    # One-time packing (hoisted out of the forward path).
    params = prepare_qnetwork_params(w1, b1, w2, b2, matmul_dtype=jnp.bfloat16)

    q = qnetwork_forward(obs, params)
    q = jax.block_until_ready(q)
    assert q.shape == (batch, action_size)

    # Tight check vs. a reference using the same bf16-matmul / f32-accumulate recipe.
    x = obs.reshape(batch, -1)
    mm = params["matmul_dtype"]
    h_ref = jnp.maximum(
        jnp.dot(x.astype(mm), w1.astype(mm), preferred_element_type=jnp.float32) + b1, 0.0)
    ref_mm = jnp.dot(h_ref.astype(mm), w2.astype(mm),
                     preferred_element_type=jnp.float32) + b2
    assert jnp.allclose(q, ref_mm, atol=1e-4, rtol=1e-4), \
        f"max abs err vs matched ref: {float(jnp.max(jnp.abs(q - ref_mm)))}"

    # Loose check vs. the exact f32 module semantics (bf16 matmul inputs).
    # TODO(synk): callers needing exact-f32 Q-values (TD targets / argmax ties)
    # should pass matmul_dtype=jnp.float32 to prepare_qnetwork_params.
    ref_f32 = jnp.maximum(x @ w1 + b1, 0.0) @ w2 + b2
    assert jnp.allclose(q, ref_f32, atol=5e-2, rtol=5e-2), \
        f"max abs err vs f32 ref: {float(jnp.max(jnp.abs(q - ref_f32)))}"

    print("KERNEL_OK")
</pallas_src>

<mosaic_0001>
module attributes {stable_mosaic.version = 11 : i64} {
  func.func @qnet_kernel(%arg0: i32, %arg1: memref<16x64xf32, #tpu.memory_space<vmem>>, %arg2: memref<64x128xbf16, #tpu.memory_space<vmem>>, %arg3: memref<1x128xf32, #tpu.memory_space<vmem>>, %arg4: memref<128x128xbf16, #tpu.memory_space<vmem>>, %arg5: memref<1x128xf32, #tpu.memory_space<vmem>>, %arg6: memref<16x8xf32, #tpu.memory_space<vmem>>) attributes {dimension_semantics = [#tpu.dimension_semantics<parallel>], iteration_bounds = array<i64: 1>, scalar_prefetch = 0 : i64, scratch_operands = 0 : i64, tpu.core_type = #tpu.core_type<tc>, window_params = [{transform_indices = @transform_0, window_bounds = array<i64: 16, 64>}, {pipeline_mode = #tpu.pipeline_mode<synchronous>, transform_indices = @transform_1, window_bounds = array<i64: 64, 128>}, {pipeline_mode = #tpu.pipeline_mode<synchronous>, transform_indices = @transform_2, window_bounds = array<i64: 1, 128>}, {pipeline_mode = #tpu.pipeline_mode<synchronous>, transform_indices = @transform_3, window_bounds = array<i64: 128, 128>}, {pipeline_mode = #tpu.pipeline_mode<synchronous>, transform_indices = @transform_4, window_bounds = array<i64: 1, 128>}, {transform_indices = @transform_5, window_bounds = array<i64: 16, 8>}]} {
    %c0 = arith.constant 0 : index
    %c0_0 = arith.constant 0 : index
    %0 = vector.load %arg1[%c0, %c0_0] : memref<16x64xf32, #tpu.memory_space<vmem>>, vector<16x64xf32>
    %1 = arith.truncf %0 : vector<16x64xf32> to vector<16x64xbf16>
    %c0_1 = arith.constant 0 : index
    %c0_2 = arith.constant 0 : index
    %2 = vector.load %arg2[%c0_1, %c0_2] : memref<64x128xbf16, #tpu.memory_space<vmem>>, vector<64x128xbf16>
    %cst = arith.constant dense<0.000000e+00> : vector<16x128xf32>
    %3 = tpu.matmul %1, %2, %cst {dimension_numbers = #tpu.dot_dimension_numbers<[1], [0], [0], [1], [0, 0, 1, 1], [], []>} : vector<16x64xbf16>, vector<64x128xbf16>, vector<16x128xf32> -> vector<16x128xf32>
    %c0_3 = arith.constant 0 : index
    %c0_4 = arith.constant 0 : index
    %4 = vector.load %arg3[%c0_3, %c0_4] : memref<1x128xf32, #tpu.memory_space<vmem>>, vector<1x128xf32>
    %5 = vector.broadcast %4 : vector<1x128xf32> to vector<16x128xf32>
    %6 = arith.addf %3, %5 : vector<16x128xf32>
    %cst_5 = arith.constant 0.000000e+00 : f32
    %7 = vector.broadcast %cst_5 : f32 to vector<16x128xf32>
    %8 = arith.maximumf %6, %7 : vector<16x128xf32>
    %9 = arith.truncf %8 : vector<16x128xf32> to vector<16x128xbf16>
    %c0_6 = arith.constant 0 : index
    %c0_7 = arith.constant 0 : index
    %10 = vector.load %arg4[%c0_6, %c0_7] : memref<128x128xbf16, #tpu.memory_space<vmem>>, vector<128x128xbf16>
    %cst_8 = arith.constant dense<0.000000e+00> : vector<16x128xf32>
    %11 = tpu.matmul %9, %10, %cst_8 {dimension_numbers = #tpu.dot_dimension_numbers<[1], [0], [0], [1], [0, 0, 1, 1], [], []>} : vector<16x128xbf16>, vector<128x128xbf16>, vector<16x128xf32> -> vector<16x128xf32>
    %c0_9 = arith.constant 0 : index
    %c0_10 = arith.constant 0 : index
    %12 = vector.load %arg5[%c0_9, %c0_10] : memref<1x128xf32, #tpu.memory_space<vmem>>, vector<1x128xf32>
    %13 = vector.broadcast %12 : vector<1x128xf32> to vector<16x128xf32>
    %14 = arith.addf %11, %13 : vector<16x128xf32>
    %15 = vector.extract_strided_slice %14 {offsets = [0, 0], sizes = [16, 8], strides = [1, 1]} : vector<16x128xf32> to vector<16x8xf32>
    %c0_11 = arith.constant 0 : index
    %c0_12 = arith.constant 0 : index
    %16 = vector.load %arg6[%c0_11, %c0_12] : memref<16x8xf32, #tpu.memory_space<vmem>>, vector<16x8xf32>
    tpu.vector_store %arg6[%c0_11, %c0_12], %15 {strides = array<i32>} : memref<16x8xf32, #tpu.memory_space<vmem>>, vector<16x8xf32>,
    return
  }
  func.func @transform_0(%arg0: i32) -> (i32, i32) {
    %c0_i32 = arith.constant 0 : i32
    %c0_i32_0 = arith.constant 0 : i32
    return %arg0, %c0_i32 : i32, i32
  }
  func.func @transform_1(%arg0: i32) -> (i32, i32) {
    %c0_i32 = arith.constant 0 : i32
    %c0_i32_0 = arith.constant 0 : i32
    %c0_i32_1 = arith.constant 0 : i32
    return %c0_i32, %c0_i32_0 : i32, i32
  }
  func.func @transform_2(%arg0: i32) -> (i32, i32) {
    %c0_i32 = arith.constant 0 : i32
    %c0_i32_0 = arith.constant 0 : i32
    %c0_i32_1 = arith.constant 0 : i32
    return %c0_i32, %c0_i32_0 : i32, i32
  }
  func.func @transform_3(%arg0: i32) -> (i32, i32) {
    %c0_i32 = arith.constant 0 : i32
    %c0_i32_0 = arith.constant 0 : i32
    %c0_i32_1 = arith.constant 0 : i32
    return %c0_i32, %c0_i32_0 : i32, i32
  }
  func.func @transform_4(%arg0: i32) -> (i32, i32) {
    %c0_i32 = arith.constant 0 : i32
    %c0_i32_0 = arith.constant 0 : i32
    %c0_i32_1 = arith.constant 0 : i32
    return %c0_i32, %c0_i32_0 : i32, i32
  }
  func.func @transform_5(%arg0: i32) -> (i32, i32) {
    %c0_i32 = arith.constant 0 : i32
    %c0_i32_0 = arith.constant 0 : i32
    return %arg0, %c0_i32 : i32, i32
  }
}

</mosaic_0001>

<bundles_post_ra>
// kernel: tpu_custom_call.1
= control target key start
LH: loop header
LB: loop body
LE: loop exit
PB: predicated region body
PF: predicated region fallthrough
CT: control target
= control target key end

     0   :  { %10 = vsyncpa [#allocation3], 0  ;;  %s423_s0 = inlined_call_operand.hbm [shape: f32[16,64], index: 0, kind: input, shape index: {}]   ;;  %s424_s1 = inlined_call_operand.hbm [shape: bf16[64,128], index: 1, kind: input, shape index: {}]   ;;  %s425_s2 = inlined_call_operand.vmem [shape: f32[1,128], index: 2, kind: input, shape index: {}]   ;;  %s426_s3 = inlined_call_operand.hbm [shape: bf16[128,128], index: 3, kind: input, shape index: {}]   ;;  %s427_s4 = inlined_call_operand.vmem [shape: f32[1,128], index: 4, kind: input, shape index: {}]   ;;  %s428_s5 = inlined_call_operand.vmem [shape: f32[16,8], index: 5, kind: output, shape index: {}]  }
   0x1   :  { %11 = vsyncpa [#allocation5], 0  ;;  %s29_s20 = sshll.u32 %s424_s1, 4  ;;  %s365_s21 = smov [#allocation4]   ;;  %s30_s20 = int_to_ptr.hbm [resolvable:$true] %s29_s20 }
   0x2   :  { %s31_s22 = sshll.u32 %s365_s21, 4  ;;  %s16_s25 = sshll.u32 %s423_s0, 4  ;;  %s32_s22 = int_to_ptr.vmem [resolvable:$true] %s31_s22  ;;  %s17_s25 = int_to_ptr.hbm [resolvable:$true] %s16_s25 }
   0x3   :  { %s366_s26 = smov 64   ;;  %s367_s27 = smov 4  }
   0x4   :  { %37 = dma.hbm_to_vmem [thread:$0]  %s30_s20, 512, %s32_s22, [#allocation5], %s366_s26, %s366_s26, %s367_s27  }
   0x5   :  { %s368_s28 = smov [#allocation2]   ;;  %s369_s30 = smov 128  }
   0x6   :  { %s18_s29 = sshll.u32 %s368_s28, 4  ;;  %s370_s6 = smov 8   ;;  %s19_s29 = int_to_ptr.vmem [resolvable:$true] %s18_s29 }
   0x7   :  { %24 = dma.hbm_to_vmem [thread:$0]  %s17_s25, 256, %s19_s29, [#allocation3], %s369_s30, %s369_s30, %s370_s6  }
   0x8   :  { %s44_s8 = sshll.u32 %s426_s3, 4  ;;  %s371_s9 = smov [#allocation6]   ;;  %s45_s8 = int_to_ptr.hbm [resolvable:$true] %s44_s8 }
   0x9   :  { %s46_s10 = sshll.u32 %s371_s9, 4  ;;  %s47_s10 = int_to_ptr.vmem [resolvable:$true] %s46_s10 }
   0xa   :  { %52 = dma.hbm_to_vmem [thread:$0]  %s45_s8, 1024, %s47_s10, [#allocation5], %s366_s26, %s366_s26, %s367_s27  }
   0xb   :  { %361 = dma.done.wait [#allocation3], 256  }
   0xc   :  { %362 = vsyncadd [#allocation3], 4294967040 }
   0xd   :  { %363 = dma.done.wait [#allocation5], 1536  }
   0xe   :  { %364 = vsyncadd [#allocation5], 4294965760  ;;  %v271_v0 = vld [vmem:[#allocation4 + $0x18] sm:$0xff]  ;;  %v270_v1 = vld [vmem:[#allocation4 + $0x10] sm:$0xff]  ;;  %vm107_vm0 = vcmask 523264   ;;  %vm210_vm1 = vcmask 64512  }
   0xf   :  { %115 = vmatpush.bf16.msra.mxu0 %v271_v0  ;;  %v279_v2 = vld [vmem:[#allocation6 + $0x38] sm:$0xff]  ;;  %v278_v3 = vld [vmem:[#allocation6 + $0x30] sm:$0xff]  ;;  %v269_v4 = vld [vmem:[#allocation4 + $0x8] sm:$0xff] }
  0x10   :  { %196 = vmatpush.bf16.msra.mxu1 %v279_v2  ;;  %v277_v5 = vld [vmem:[#allocation6 + $0x28] sm:$0xff]  ;;  %v268_v6 = vld [vmem:[#allocation4] sm:$0xff]  ;;  %v68_v7 = vld [vmem:[#allocation2] sm:$0xff] }
  0x11   :  { %v69_v8 = vld [vmem:[#allocation2 + $0x8] sm:$0xff]  ;;  %v276_v9 = vld [vmem:[#allocation6 + $0x20] sm:$0xff]  ;;  %v274_v12 = vld [vmem:[#allocation6 + $0x10] sm:$0xff] }
  0x12   :  { %v70_v10 = vpack.c.bf16 %v69_v8, %v68_v7  ;;  %v275_v11 = vld [vmem:[#allocation6 + $0x18] sm:$0xff]  ;;  %v273_v13 = vld [vmem:[#allocation6 + $0x8] sm:$0xff]  ;;  %v272_v14 = vld [vmem:[#allocation6] sm:$0xff] }
  0x13   :  { %116 = vmatpush.bf16.msra.mxu0 %v270_v1  ;;  %v287_v16 = vld [vmem:[%s425_s2] ss:$0 sm:$0xff] }
  0x14   :  { %197 = vmatpush.bf16.msra.mxu1 %v278_v3  ;;  %v288_v23 = vld [vmem:[%s427_s4] ss:$0 sm:$0xff] }
  0x17   :  { %117 = vmatpush.bf16.msra.mxu0 %v269_v4 }
  0x18   :  { %198 = vmatpush.bf16.msra.mxu1 %v277_v5 }
  0x1b   :  { %118 = vmatpush.bf16.msra.mxu0 %v268_v6 }
  0x1c   :  { %199 = vmatpush.bf16.msra.mxu1 %v276_v9 }
  0x1e   :  { %235 = vmatmul.msk.bf16.vlgmr.msra.gmra.mxu0 %vm107_vm0, %v70_v10 }
  0x20   :  { %200 = vmatpush.bf16.msra.mxu1 %v275_v11 }
  0x24   :  { %201 = vmatpush.bf16.msra.mxu1 %v274_v12 }
  0x28   :  { %202 = vmatpush.bf16.msra.mxu1 %v273_v13 }
  0x2c   :  { %203 = vmatpush.bf16.msra.mxu1 %v272_v14 }
  0x9b   :  { %v120_v15 = vpop.f32.mrf.mxu0 }
  0x9c   :  { %v121_v17 = vadd.f32 %v287_v16, %v120_v15 }
  0x9e   :  { %v125_v20 = vmax.f32 %v121_v17, 0.0 }
  0xa3   :  { %v122_v18 = vpop.f32.mrf.mxu0 }
  0xa4   :  { %v123_v19 = vadd.f32 %v287_v16, %v122_v18 }
  0xa6   :  { %v126_v21 = vmax.f32 %v123_v19, 0.0 }
  0xa8   :  { %v127_v22 = vpack.c.bf16 %v126_v21, %v125_v20 }
  0xaa   :  { %204 = vmatmul.bf16.vlgmr.msra.gmra.mxu1 %v127_v22 }
 0x127   :  { %v205_v24 = vpop.f32.mrf.mxu1 }
 0x128   :  { %v206_v25 = vadd.f32 %v288_v23, %v205_v24 }
 0x12a   :  { %211 = vst.msk [vmem:[%s428_s5] sm:$0xff] %vm210_vm1, %v206_v25 }
 0x12f   :  { %v207_v26 = vpop.f32.mrf.mxu1 }
 0x130   :  { %v208_v27 = vadd.f32 %v288_v23, %v207_v26 }
 0x132   :  { %212 = vst.msk [vmem:[%s428_s5 + $0x8] sm:$0xff] %vm210_vm1, %v208_v27 }
 0x133   :  { %217 = vsyncpa [#allocation3], 1 }
 0x134   :  { %218 = vsyncpa [#allocation5], 1 }

</bundles_post_ra>
